<compile_context>
chip_gen: v7x
topology: tpu7x:2x2x1
jax: 0.10.0
libtpu: 0.0.40
codegen_flags: <defaults>
</compile_context>

<pallas_src>
import functools

import numpy as np
import jax
import jax.numpy as jnp
from jax import lax
from jax.experimental import pallas as pl
from jax.experimental.pallas import tpu as pltpu

_LN_10000 = float(np.log(10000.0))


def _pe_add_kernel(x_ref, o_ref, *, d_model, ppr, d_shift, tile_rows):
    """x_ref / o_ref: (tile_rows, L) tile of one batch element's flattened (S*D) plane.

    Regenerates the positional-encoding values for this tile on the fly.
    The exp/sin run on the EUP (+ VPU polynomial), which is idle in this
    bandwidth-bound kernel, so the compute hides under the HBM DMA.
    """
    s_idx = pl.program_id(1)
    tr, L = x_ref.shape

    # Row index within this batch element's flattened (S*D) plane.
    row = lax.broadcasted_iota(jnp.int32, (tr, 1), 0) + s_idx * tile_rows   # (tr, 1)
    lane = lax.broadcasted_iota(jnp.int32, (1, L), 1)                       # (1, L)

    if ppr > 1:
        # Packed lane-dense view: each 128-lane row holds `ppr` consecutive
        # positions of d_model (a power of two) features each.  Only shift and
        # mask are needed to recover (pos, i) -- no vector integer div/mod.
        i = lane & (d_model - 1)                  # feature index      (1, L)
        pos = row * ppr + (lane >> d_shift)       # sequence position  (tr, L)
    else:
        i = lane                                  # (1, L)
        pos = row                                 # (tr, 1)

    parity = i & 1                                # 0 for even i, 1 for odd i
    i_even = (i - parity).astype(jnp.float32)
    # 10000 ** (-(i_even / d_model)), computed per lane only (cheap).
    inv_freq = jnp.exp(i_even * jnp.float32(-_LN_10000 / d_model))          # (1, L)
    # cos(t) == sin(t + pi/2): fold the even/odd select into a phase shift so
    # only one transcendental per element is needed.
    phase = jnp.where(parity == 0, jnp.float32(0.0), jnp.float32(np.pi / 2))  # (1, L)
    angle = pos.astype(jnp.float32) * inv_freq + phase                      # (tr, L)
    pe = jnp.sin(angle)

    o_ref[...] = (x_ref[...].astype(jnp.float32) + pe).astype(o_ref.dtype)


def positional_encoding_forward(x: jax.Array, *,
                                target_block_bytes: int = 2 * 1024 * 1024) -> jax.Array:
    """out = x + pe for x of shape (B, S, D); pe is computed inside the kernel."""
    B, S, D = x.shape

    # ---- choose a lane-dense 2-D view of each (S, D) plane --------------------
    if D % 128 != 0 and 128 % D == 0 and S % (128 // D) == 0:
        # Small power-of-two d_model (demo: D=32): pack 128//D positions per
        # 128-lane row so stores are unmasked full-width vst.
        L = 128
        ppr = 128 // D
        d_shift = D.bit_length() - 1          # log2(D); D divides 128 => pow2
    else:
        # d_model is >= a lane row (usually a multiple of 128) or can't be
        # packed cleanly; use it directly as the lane dimension.
        L = D
        ppr = 1
        d_shift = 0
    R = (S * D) // L                          # rows per batch element
    x_v = x.reshape(B, R, L)

    # ---- row-tile size: ~2 MiB blocks -> ~4 live blocks (~8 MiB), safely under
    # the default scoped-VMEM limit on v5e (16 MiB) and v6e/v7x (32 MiB). ------
    row_bytes = L * x.dtype.itemsize
    tr = max(8, (target_block_bytes // row_bytes) // 8 * 8)   # multiple of 8
    tr = min(tr, R)                                           # or full extent
    grid = (B, pl.cdiv(R, tr))
    # TODO(synk): for tiny S*D with huge B, batch could also be folded into the
    # row axis to amortize the ~0.35 us per-grid-step overhead further.

    kernel = functools.partial(_pe_add_kernel, d_model=D, ppr=ppr,
                               d_shift=d_shift, tile_rows=tr)
    out_v = pl.pallas_call(
        kernel,
        out_shape=jax.ShapeDtypeStruct((B, R, L), x.dtype),
        grid_spec=pltpu.PrefetchScalarGridSpec(
            num_scalar_prefetch=0,
            grid=grid,
            in_specs=[pl.BlockSpec((None, tr, L), lambda b, s: (b, s, 0))],
            out_specs=pl.BlockSpec((None, tr, L), lambda b, s: (b, s, 0)),
        ),
        compiler_params=pltpu.CompilerParams(
            dimension_semantics=("parallel", "parallel"),   # v7x: 2 TCs share grid
            vmem_limit_bytes=32 * 1024 * 1024,
        ),
        # In-place add when the caller donates x (saves the output allocation;
        # XLA inserts a copy automatically if x is still live).
        input_output_aliases={0: 0},
    )(x_v)
    return out_v.reshape(B, S, D)


def _build_pe_reference(d_model: int, max_seq_length: int) -> jnp.ndarray:
    """Vectorized float64 reference of the PyTorch __init__ double loop."""
    pos = np.arange(max_seq_length, dtype=np.float64)[:, None]
    i = np.arange(d_model, dtype=np.float64)[None, :]
    i_even = i - (i % 2)
    angle = pos / np.power(10000.0, i_even / d_model)
    pe = np.where((np.arange(d_model)[None, :] % 2) == 0, np.sin(angle), np.cos(angle))
    return jnp.asarray(pe.astype(np.float32))[None, :, :]    # (1, S, D)


if __name__ == "__main__":
    d_model = 32
    max_seq_length = 8
    batch = 2

    key = jax.random.PRNGKey(0)
    x = jax.random.normal(key, (batch, max_seq_length, d_model), dtype=jnp.float32)

    # Reference (computed before the kernel call, which may alias/donate x).
    pe_ref = _build_pe_reference(d_model, max_seq_length)
    ref = jax.block_until_ready(x + pe_ref)

    out = positional_encoding_forward(x)
    out = jax.block_until_ready(out)

    assert out.shape == (batch, max_seq_length, d_model)
    # Kernel computes pe in f32 via exp/sin; allow small transcendental error
    # vs the float64-built reference table.
    assert jnp.allclose(out, ref, atol=1e-4, rtol=1e-4), "mismatch vs reference"

    print("KERNEL_OK")
</pallas_src>

<mosaic_0001>
module attributes {stable_mosaic.version = 11 : i64} {
  func.func @_pe_add_kernel(%arg0: i32, %arg1: i32, %arg2: memref<1x2x128xf32, #tpu.memory_space<vmem>>, %arg3: memref<1x2x128xf32, #tpu.memory_space<vmem>>) attributes {dimension_semantics = [#tpu.dimension_semantics<parallel>, #tpu.dimension_semantics<parallel>], iteration_bounds = array<i64: 2, 1>, scalar_prefetch = 0 : i64, scratch_operands = 0 : i64, tpu.core_type = #tpu.core_type<tc>, window_params = [{transform_indices = @transform_0, window_bounds = array<i64: 1, 2, 128>}, {transform_indices = @transform_1, window_bounds = array<i64: 1, 2, 128>}]} {
    %0 = tpu.iota {dimensions = array<i32: 0>} : vector<2x1xi32>
    %c2_i32 = arith.constant 2 : i32
    %1 = arith.muli %arg1, %c2_i32 : i32
    %2 = vector.broadcast %1 : i32 to vector<2x1xi32>
    %3 = arith.addi %0, %2 : vector<2x1xi32>
    %4 = tpu.iota {dimensions = array<i32: 1>} : vector<1x128xi32>
    %c31_i32 = arith.constant 31 : i32
    %5 = vector.broadcast %c31_i32 : i32 to vector<1x128xi32>
    %6 = arith.andi %4, %5 : vector<1x128xi32>
    %c4_i32 = arith.constant 4 : i32
    %7 = vector.broadcast %c4_i32 : i32 to vector<2x1xi32>
    %8 = arith.muli %3, %7 : vector<2x1xi32>
    %c5_i32 = arith.constant 5 : i32
    %9 = vector.broadcast %c5_i32 : i32 to vector<1x128xi32>
    %10 = arith.shrsi %4, %9 : vector<1x128xi32>
    %11 = vector.broadcast %8 : vector<2x1xi32> to vector<2x128xi32>
    %12 = vector.broadcast %10 : vector<1x128xi32> to vector<2x128xi32>
    %13 = arith.addi %11, %12 : vector<2x128xi32>
    %c1_i32 = arith.constant 1 : i32
    %14 = vector.broadcast %c1_i32 : i32 to vector<1x128xi32>
    %15 = arith.andi %6, %14 : vector<1x128xi32>
    %16 = arith.subi %6, %15 : vector<1x128xi32>
    %17 = arith.sitofp %16 : vector<1x128xi32> to vector<1x128xf32>
    %cst = arith.constant -0.287823141 : f32
    %18 = vector.broadcast %cst : f32 to vector<1x128xf32>
    %19 = arith.mulf %17, %18 : vector<1x128xf32>
    %20 = math.exp %19 : vector<1x128xf32>
    %c0_i32 = arith.constant 0 : i32
    %21 = vector.broadcast %c0_i32 : i32 to vector<1x128xi32>
    %22 = arith.cmpi eq, %15, %21 : vector<1x128xi32>
    %cst_0 = arith.constant 0.000000e+00 : f32
    %cst_1 = arith.constant 1.57079637 : f32
    %23 = vector.broadcast %cst_0 : f32 to vector<1x128xf32>
    %24 = vector.broadcast %cst_1 : f32 to vector<1x128xf32>
    %25 = arith.select %22, %23, %24 : vector<1x128xi1>, vector<1x128xf32>
    %26 = arith.sitofp %13 : vector<2x128xi32> to vector<2x128xf32>
    %27 = vector.broadcast %20 : vector<1x128xf32> to vector<2x128xf32>
    %28 = arith.mulf %26, %27 : vector<2x128xf32>
    %29 = vector.broadcast %25 : vector<1x128xf32> to vector<2x128xf32>
    %30 = arith.addf %28, %29 : vector<2x128xf32>
    %31 = math.sin %30 : vector<2x128xf32>
    %c0 = arith.constant 0 : index
    %c0_2 = arith.constant 0 : index
    %c0_3 = arith.constant 0 : index
    %32 = vector.load %arg2[%c0, %c0_2, %c0_3] : memref<1x2x128xf32, #tpu.memory_space<vmem>>, vector<1x2x128xf32>
    %33 = vector.shape_cast %32 : vector<1x2x128xf32> to vector<2x128xf32>
    %34 = arith.addf %33, %31 : vector<2x128xf32>
    %c0_4 = arith.constant 0 : index
    %c0_5 = arith.constant 0 : index
    %c0_6 = arith.constant 0 : index
    %35 = vector.load %arg3[%c0_4, %c0_5, %c0_6] : memref<1x2x128xf32, #tpu.memory_space<vmem>>, vector<1x2x128xf32>
    %36 = vector.shape_cast %35 : vector<1x2x128xf32> to vector<2x128xf32>
    %37 = vector.shape_cast %34 : vector<2x128xf32> to vector<1x2x128xf32>
    tpu.vector_store %arg3[%c0_4, %c0_5, %c0_6], %37 {strides = array<i32>} : memref<1x2x128xf32, #tpu.memory_space<vmem>>, vector<1x2x128xf32>,
    return
  }
  func.func @transform_0(%arg0: i32, %arg1: i32) -> (i32, i32, i32) {
    %c0_i32 = arith.constant 0 : i32
    %c0_i32_0 = arith.constant 0 : i32
    return %arg0, %arg1, %c0_i32 : i32, i32, i32
  }
  func.func @transform_1(%arg0: i32, %arg1: i32) -> (i32, i32, i32) {
    %c0_i32 = arith.constant 0 : i32
    %c0_i32_0 = arith.constant 0 : i32
    return %arg0, %arg1, %c0_i32 : i32, i32, i32
  }
}

</mosaic_0001>

<bundles_post_ra>
// kernel: tpu_custom_call.1
= control target key start
LH: loop header
LB: loop body
LE: loop exit
PB: predicated region body
PF: predicated region fallthrough
CT: control target
= control target key end

     0   :  { %6 = vsyncpa [#allocation3], 0  ;;  %s802_s0 = inlined_call_operand.hbm [shape: f32[2,2,128], index: 0, kind: input, shape index: {}, may-alias: {0,1}]   ;;  %s803_s1 = inlined_call_operand.hbm [shape: f32[2,2,128], index: 1, kind: output, shape index: {}, may-alias: {0,1}]  }
   0x1   :  { %8 = vsyncpa [#allocation3 + $0x1], 0 }
   0x2   :  { %9 = vsyncpa [#allocation4], 0 }
   0x3   :  { %11 = vsyncpa [#allocation4 + $0x1], 0  ;;  %s602_s6 = smov 0   ;;  %s604_s7 = smov 0  }
   0x4   :  { %s606_s8 = smov 0   ;;  %s608_s9 = smov 0  }
   0x5   :  { %s610_s10 = smov 0   ;;  %s612_s11 = smov 0  }
   0x6 LB: > { %s373_s12 = sadd.s32 4294967295, %s581_s11   ;;  %s374_s13 = sadd.s32 4294967294, %s581_s11   ;;  %s581_s11 = sphi %s612_s11, %s17_s11   ;;  %s577_s10 = sphi %s610_s10, %s819_s10   ;;  %s573_s9 = sphi %s608_s9, %s818_s9   ;;  %s569_s8 = sphi %s606_s8, %s817_s8   ;;  %s565_s7 = sphi %s604_s7, %s816_s7   ;;  %s561_s6 = sphi %s602_s6, %s815_s6  }
   0x7   : > { %s29_s14 = sadd.s32 1, %s577_s10  ;;  %s38_s15 = sadd.s32 1, %s569_s8 }
   0x8   : > { %p31_p0 = scmp.ge.s32.totalorder %s29_s14, 2  ;;  %p45_p1 = scmp.ne.s32.totalorder %s569_s8, %s565_s7 }
   0x9   : > { %p46_p2 = scmp.eq.s32.totalorder %s581_s11, 0  ;;  %p51_p3 = scmp.ne.s32.totalorder %s565_s7, %s561_s6 }
   0xa   : > { %s821_s14 = smov (%p31_p0, %s29_s14), 0  ;;  %p52_p5 = scmp.eq.s32.totalorder %s373_s12, 0 }
   0xb   : > { %p643_p4 = por %p46_p2, %p45_p1  ;;  %s33_s17 = ssub.s32 %s577_s10, %s821_s14 }
   0xc   : > { %p77_p6 = scmp.eq.s32.totalorder %s373_s12, 1  ;;  %p36_p7 = scmp.eq.s32.totalorder %s33_s17, 0 }
   0xd   : > { %p649_p8 = por %p52_p5, %p51_p3  ;;  %p83_p10 = scmp.eq.s32.totalorder %s374_s13, 1 }
   0xe   : > { %p653_p9 = por %p77_p6, %p45_p1  ;;  %p406_p13 = scmp.lt.s32.totalorder %s581_s11, 2 }
   0xf   : > { %s658_s20 = scalar_select %p36_p7, %s569_s8, %s38_s15  }
  0x10   : > { %s807_s19 = scalar_select %p653_p9, 1, 0 }
  0x11   : > { %p660_p11 = por %p83_p10, %p51_p3  ;;  %s103_s22 = sand.u32 1, %s569_s8  }
  0x12   : > { %s377_s23 = sshll.u32 %s103_s22, 1  ;;  %s378_s24 = sshll.u32 %s577_s10, 5 }
  0x13   : > { %s808_s21 = scalar_select %p660_p11, 1, 0 }
  0x14   : > { %s671_s27 = scalar_lea.hbm %s802_s0, %s378_s24  ;;  %s107_s28 = scalar_lea.vmem [#allocation2], %s377_s23 }
  0x15   : > { %s115_s29 = sshll.u32 %s107_s28, 4  ;;  %p677_p0 = pnand %p406_p13, %p643_p4  ;;  %s673_s29 = int_to_ptr.vmem [resolvable:$true] %s115_s29 }
  0x16   : > { %s104_s2 = scalar_lea.sflag [#allocation3], %s103_s22  ;;  %s469_s3 = scalar_lea.hbm %s671_s27, 32 }
  0x17   : > { %p470_p3 = scmp.ne.s32.totalorder %s671_s27, %s469_s3  ;;  %p471_p5 = pneg %p677_p0 }
  0x18   : > { %s474_s12 = scalar_lea.hbm %s802_s0, 64  ;;  %p475_p4 = scmp.lt.u32.totalorder %s671_s27, %s802_s0 }
  0x19   : > { %p472_p6 = pnand %p471_p5, %p470_p3  ;;  %p476_p10 = scmp.lt.u32.totalorder %s474_s12, %s469_s3 }
  0x1a   : > { %p478_p12 = scmp.lt.u32.totalorder %s469_s3, %s671_s27 }
  0x1b   : > { %p473_p7 = pneg %p472_p6  ;;  %p477_p13 = por %p476_p10, %p475_p4 }
  0x1d   : > { %p479_p1 = por %p478_p12, %p477_p13 }
  0x1f   : > { %p480_p2 = pnand %p479_p1, %p473_p7 }
  0x21   : > { %483 = shalt.err (!%p480_p2)
}
  0x22   : > { %s484_s16 = scalar_lea.vmem %s673_s29, 32  ;;  %s583_s17 = smov [#allocation2]  }
  0x23   : > { %p485_p3 = scmp.ne.s32.totalorder %s673_s29, %s484_s16  ;;  %s489_s22 = sshll.u32 %s583_s17, 4  ;;  %s490_s22 = int_to_ptr.vmem [resolvable:$false] %s489_s22 }
  0x24   : > { %s491_s23 = scalar_lea.vmem %s490_s22, 64  ;;  %p492_p9 = scmp.lt.s32.totalorder %s673_s29, %s490_s22 }
  0x25   : > { %p487_p6 = pnand %p485_p3, %p471_p5  ;;  %p493_p4 = scmp.lt.s32.totalorder %s491_s23, %s484_s16 }
  0x27   : > { %p488_p11 = pneg %p487_p6  ;;  %p494_p10 = por %p493_p4, %p492_p9 }
  0x29   : > { %p495_p12 = pnand %p494_p10, %p488_p11 }
  0x2b   : > { %498 = shalt.err (!%p495_p12)
}
  0x2c   : > { %401 = dma.hbm_to_vmem [thread:$0]  (!%p677_p0), %s671_s27, 32, %s673_s29, %s104_s2  }
  0x2d   : > { %p810_p1 = scmp.lt.s32.totalorder %s581_s11, 3  ;;  %p811_p2 = scmp.ge.s32.totalorder %s581_s11, 1 }
  0x2f   : > { %p121_p5 = pnand %p811_p2, %p810_p1 }
  0x30   : > { %s713_s24 = sand.u32 (!%p121_p5), 1, %s565_s7  }
  0x31   : > { %124 = sbr.rel (%p121_p5) target bundleno = 184 (0xb8), region = 24  ;;  %s380_s25 = sshll.u32 (!%p121_p5), %s713_s24, 1 }
  0x32   : > { %s127_s26 = scalar_lea.sflag (!%p121_p5), [#allocation3], %s713_s24  ;;  %s719_s28 = scalar_lea.vmem (!%p121_p5), [#allocation2], %s380_s25 }
  0x38   : > { %552 = dma.done.wait (%p649_p8), %s127_s26, 32  }
  0x39   : > { %554 = vsyncadd (%p649_p8), %s127_s26, 4294967264  ;;  %v149_v0 = vlaneseq  ;;  %v584_v14 = vmov 1.5707964   ;;  %v585_v29 = vmov 683565275   ;;  %s148_s18 = scalar_lea.vmem [#allocation5], %s380_s25 }
  0x3a   : > { %v586_v31 = vmov 2475754826   ;;  %v587_v33 = vmov 2131351028   ;;  %v588_v35 = vmov 2102212464  }
  0x3b   : > { %v155_v1 = vand.u32 127, %v149_v0  ;;  %v150_v6 = vshrl.u32 %v149_v0, 7  ;;  %v589_v37 = vmov 920167782   ;;  %v590_v44 = vmov 1326507024  }
  0x3c   : > { %s293_s27 = sshll.u32 %s148_s18, 4  ;;  %s387_s29 = sshll.u32 %s573_s9, 5  ;;  %s750_s27 = int_to_ptr.vmem [resolvable:$true] %s293_s27 }
  0x3d   : > { %v156_v2 = vand.u32 31, %v155_v1  ;;  %v157_v9 = vmul.u32 4, %v150_v6  ;;  %v158_v10 = vshra.s32 %v155_v1, 5  ;;  %s755_s3 = scalar_lea.hbm %s803_s1, %s387_s29  ;;  %s279_s4 = scalar_lea.sflag [#allocation4], %s713_s24 }
  0x3e   : > { %s499_s5 = scalar_lea.vmem %s750_s27, 32  ;;  %p812_p9 = scmp.ne.s32.totalorder %s807_s19, 0 }
  0x3f   : > { %v160_v3 = vand.u32 1, %v156_v2  ;;  %v159_v11 = vadd.s32 %v158_v10, %v157_v9  ;;  %p500_p8 = scmp.ne.s32.totalorder %s750_s27, %s499_s5  ;;  %s591_s9 = smov [#allocation5]  }
  0x40   : > { %s503_s12 = sshll.u32 %s591_s9, 4  ;;  %s504_s12 = int_to_ptr.vmem [resolvable:$false] %s503_s12 }
  0x41   : > { %v161_v4 = vsub.s32 %v156_v2, %v160_v3  ;;  %vm166_vm0 = vcmp.eq.s32.totalorder %v160_v3, 0  ;;  %v168_v12 = vcvt.s32.f32 %v159_v11  ;;  %p501_p11 = pnand %p500_p8, %p812_p9  ;;  %s505_s13 = scalar_lea.vmem %s504_s12, 64 }
  0x42   : > { %v167_v15 = vsel %vm166_vm0, 0.0, %v584_v14  ;;  %p506_p7 = scmp.lt.s32.totalorder %s750_s27, %s504_s12  ;;  %p507_p13 = scmp.lt.s32.totalorder %s505_s13, %s499_s5 }
  0x43   : > { %v162_v5 = vcvt.s32.f32 %v161_v4  ;;  %p502_p0 = pneg %p501_p11 }
  0x44   : > { %p508_p3 = por %p507_p13, %p506_p7 }
  0x45   : > { %v163_v7 = vmul.f32 -0.28782314, %v162_v5 }
  0x46   : > { %p509_p6 = pnand %p508_p3, %p502_p0 }
  0x47   : > { %v164_v8 = vmul.f32 1.442695, %v163_v7 }
  0x49   : > { %463 = vpow2.f32 %v164_v8 }
  0x53   : > { %v464_v13 = vpop.eup %463 }
  0x54   : > { %v169_v16 = vmul.f32 %v464_v13, %v168_v12 }
  0x56   : > { %v725_v17 = vadd.f32 %v169_v16, %v167_v15 }
  0x58   : > { %v174_v18 = vand.u32 2139095040, %v725_v17  ;;  %v171_v20 = vand.u32 2147483647, %v725_v17  ;;  %vm173_vm8 = vcmp.lt.s32.totalorder %v725_v17, 0  ;;  %vm263_vm13 = vweird.f32 %v725_v17 }
  0x5a   : > { %v175_v19 = vshrl.u32 %v174_v18, 23  ;;  %v178_v23 = vand.u32 8388607, %v171_v20  ;;  %vm172_vm9 = vcmp.le.f32.partialorder %v171_v20, 0.7853982 }
  0x5c   : > { %v382_v21 = vadd.s32 4294967169, %v175_v19  ;;  %v179_v26 = vor.u32 8388608, %v178_v23 }
  0x5e   : > { %v181_v22 = vadd.s32 1, %v382_v21  ;;  %v219_v46 = vshll.u32 %v179_v26, 8 }
  0x60   : > { %vm182_vm1 = vcmp.gt.s32.totalorder %v181_v22, 0 }
  0x61   : > { %v183_v24 = vsel %vm182_vm1, %v181_v22, 0 }
  0x62   : > { %v185_v25 = vand.u32 31, %v183_v24  ;;  %v184_v27 = vshrl.u32 %v183_v24, 5 }
  0x64   : > { %v186_v28 = vsub.s32 32, %v185_v25  ;;  %v188_v30 = vshll.u32 %v585_v29, %v185_v25  ;;  %v191_v32 = vshll.u32 %v586_v31, %v185_v25  ;;  %v194_v34 = vshll.u32 %v587_v33, %v185_v25 }
  0x65   : > { %v197_v36 = vshll.u32 %v588_v35, %v185_v25  ;;  %v200_v38 = vshll.u32 %v589_v37, %v185_v25  ;;  %vm203_vm2 = vcmp.lt.s32.totalorder %v184_v27, 1  ;;  %vm206_vm3 = vcmp.lt.s32.totalorder %v184_v27, 4 }
  0x66   : > { %v187_v39 = vshrl.u32 %v585_v29, %v186_v28  ;;  %v189_v40 = vshrl.u32 %v586_v31, %v186_v28  ;;  %v192_v41 = vshrl.u32 %v587_v33, %v186_v28  ;;  %v195_v42 = vshrl.u32 %v588_v35, %v186_v28 }
  0x67   : > { %v198_v43 = vshrl.u32 %v589_v37, %v186_v28  ;;  %v201_v45 = vshrl.u32 %v590_v44, %v186_v28  ;;  %vm204_vm4 = vcmp.lt.s32.totalorder %v184_v27, 2  ;;  %vm205_vm5 = vcmp.lt.s32.totalorder %v184_v27, 3  ;;  %v275_v44 = vld [vmem:[%s719_s28] sm:$0x3] }
  0x68   : > { %v190_v47 = vor.u32 %v189_v40, %v188_v30  ;;  %v193_v48 = vor.u32 %v192_v41, %v191_v32  ;;  %v196_v49 = vor.u32 %v195_v42, %v194_v34 }
  0x69   : > { %v199_v50 = vor.u32 %v198_v43, %v197_v36  ;;  %v202_v51 = vor.u32 %v201_v45, %v200_v38 }
  0x6a   : > { %v207_v52 = vsel %vm203_vm2, %v187_v39, %v190_v47  ;;  %v208_v53 = vsel %vm206_vm3, %v196_v49, 2102212464  ;;  %v211_v54 = vsel %vm203_vm2, %v190_v47, %v193_v48  ;;  %v215_v55 = vsel %vm203_vm2, %v193_v48, %v196_v49 }
  0x6b   : > { %v209_v56 = vsel %vm205_vm5, %v193_v48, %v208_v53  ;;  %v212_v57 = vsel %vm206_vm3, %v199_v50, 920167782  ;;  %v216_v58 = vsel %vm206_vm3, %v202_v51, 1326507024 }
  0x6c   : > { %v213_v59 = vsel %vm205_vm5, %v196_v49, %v212_v57  ;;  %v217_v60 = vsel %vm205_vm5, %v199_v50, %v216_v58  ;;  %v210_v61 = vsel %vm204_vm4, %v207_v52, %v209_v56 }
  0x6d   : > { %v214_v62 = vsel %vm204_vm4, %v211_v54, %v213_v59  ;;  %v218_v63 = vsel %vm204_vm4, %v215_v55, %v217_v60  ;;  %v226_v4 = vmul.u32 %v219_v46, %v210_v61 }
  0x6e   : > { %v731_v0 = vmul.u32.u64.low %v219_v46, %v218_v63  ;;  %v732_v1 = vmul.u32.u64.high %v219_v46, %v218_v63, %v731_v0  ;;  %v734_v2 = vmul.u32.u64.low %v219_v46, %v214_v62  ;;  %v735_v3 = vmul.u32.u64.high %v219_v46, %v214_v62, %v734_v2 }
  0x70   : > { %vm228_vm6 = vc.u32 %v732_v1, %v734_v2  ;;  %v229_v5 = vadd.s32 1, %v735_v3  ;;  %v227_v16 = vadd.s32 %v734_v2, %v732_v1 }
  0x72   : > { %v230_v6 = vsel %vm228_vm6, %v229_v5, %v735_v3 }
  0x73   : > { %v231_v7 = vadd.s32 %v230_v6, %v226_v4 }
  0x75   : > { %v232_v8 = vadd.s32 536870912, %v231_v7 }
  0x77   : > { %v233_v9 = vshrl.u32 %v232_v8, 30 }
  0x79   : > { %v234_v10 = vshll.u32 %v233_v9, 30  ;;  %v257_v30 = vsub.s32 4, %v233_v9 }
  0x7b   : > { %v235_v11 = vsub.s32 %v231_v7, %v234_v10  ;;  %v258_v33 = vsel %vm173_vm8, %v257_v30, %v233_v9 }
  0x7c   : > { %v260_v36 = vsel %vm172_vm9, 0, %v258_v33 }
  0x7d   : > { %v237_v12 = vsub.s32 0, %v235_v11  ;;  %v264_v37 = vadd.s32 3, %v260_v36 }
  0x7f   : > { %v383_v13 = vmin.u32 %v237_v12, %v235_v11  ;;  %v265_v38 = vand.u32 3, %v264_v37 }
  0x81   : > { %v239_v14 = vclz %v383_v13  ;;  %vm270_vm10 = vcmp.eq.s32.totalorder %v265_v38, 2  ;;  %vm267_vm11 = vcmp.eq.s32.totalorder %v265_v38, 0  ;;  %vm266_vm12 = vcmp.lt.s32.totalorder %v265_v38, 2 }
  0x83   : > { %v384_v15 = vadd.s32 4294967294, %v239_v14 }
  0x85   : > { %vm385_vm7 = vcmp.lt.s32.totalorder %v384_v15, 0 }
  0x86   : > { %v242_v18 = vsel %vm385_vm7, 0, %v384_v15 }
  0x87   : > { %v243_v19 = vsub.s32 32, %v242_v18  ;;  %v244_v21 = vshll.u32 %v235_v11, %v242_v18  ;;  %v247_v22 = vsub.s32 4294967266, %v242_v18 }
  0x89   : > { %v245_v23 = vshrl.u32 %v227_v16, %v243_v19  ;;  %v248_v24 = vadd.s32 127, %v247_v22 }
  0x8b   : > { %v246_v25 = vor.u32 %v245_v23, %v244_v21  ;;  %v249_v26 = vshll.u32 %v248_v24, 23 }
  0x8d   : > { %v250_v27 = vor.u32 4788187, %v249_v26  ;;  %v253_v28 = vcvt.s32.f32 %v246_v25 }
  0x8f   : > { %v251_v29 = vand.u32 2147483647, %v250_v27 }
  0x91   : > { %v254_v31 = vmul.f32 %v253_v28, %v251_v29 }
  0x93   : > { %v255_v32 = vxor.u32 2147483648, %v254_v31 }
  0x95   : > { %v256_v34 = vsel %vm173_vm8, %v255_v32, %v254_v31 }
  0x96   : > { %v259_v35 = vsel %vm172_vm9, %v725_v17, %v256_v34 }
  0x97   : > { %465 = vcosq.f32 %v259_v35 }
  0x98   : > { %467 = vsinq.f32 %v259_v35 }
  0xa1   : > { %v466_v39 = vpop.eup %465 }
  0xa2   : > { %v468_v40 = vpop.eup %467  ;;  %v271_v41 = vxor.u32 2147483648, %v466_v39 }
  0xa3   : > { %v268_v20 = vxor.u32 2147483648, %v468_v40 }
  0xa4   : > { %v272_v42 = vsel %vm270_vm10, %v271_v41, %v468_v40 }
  0xa5   : > { %v269_v43 = vsel %vm267_vm11, %v466_v39, %v268_v20 }
  0xa6   : > { %v273_v45 = vsel %vm266_vm12, %v269_v43, %v272_v42 }
  0xa7   : > { %v274_v46 = vsel %vm263_vm13, nan, %v273_v45 }
  0xa8   : > { %v276_v47 = vadd.f32 %v275_v44, %v274_v46 }
  0xaa   : > { %277 = vst [vmem:[%s148_s18] sm:$0x3] %v276_v47 }
  0xab   : > { %512 = shalt.err (!%p509_p6)
}
  0xac   : > { %s513_s15 = scalar_lea.hbm %s755_s3, 32  ;;  %s517_s22 = scalar_lea.hbm %s803_s1, 64 }
  0xad   : > { %p514_p4 = scmp.ne.s32.totalorder %s755_s3, %s513_s15  ;;  %p518_p1 = scmp.lt.u32.totalorder %s755_s3, %s803_s1 }
  0xae   : > { %p519_p2 = scmp.lt.u32.totalorder %s517_s22, %s513_s15  ;;  %p521_p8 = scmp.lt.u32.totalorder %s513_s15, %s755_s3 }
  0xaf   : > { %p515_p10 = pnand %p514_p4, %p812_p9 }
  0xb0   : > { %p520_p5 = por %p519_p2, %p518_p1 }
  0xb1   : > { %p516_p12 = pneg %p515_p10 }
  0xb2   : > { %p522_p11 = por %p521_p8, %p520_p5 }
  0xb4   : > { %p523_p0 = pnand %p522_p11, %p516_p12 }
  0xb6   : > { %526 = shalt.err (!%p523_p0)
}
  0xb7   : > { %396 = dma.vmem_to_hbm [thread:$0]  (%p812_p9), %s750_s27, 32, %s755_s3, %s279_s4  }
  0xb8 PF: > { %s305_s25 = sand.u32 1, %s561_s6   ;;  %p813_p7 = scmp.ne.s32.totalorder %s808_s21, 0 }
  0xb9   : > { %p814_p13 = scmp.ge.s32.totalorder %s581_s11, 2  ;;  %s306_s26 = scalar_lea.sflag [#allocation4], %s305_s25 }
  0xbb   : > { %p403_p3 = pnand %p814_p13, %p813_p7 }
  0xbd   : > { %556 = dma.done.wait (!%p403_p3), %s306_s26, 32  }
  0xbe   : > { %558 = vsyncadd (!%p403_p3), %s306_s26, 4294967264  ;;  %s17_s11 = sadd.s32 1, %s581_s11   ;;  %s815_s6 = smov %s565_s7 }
  0xbf   : > { %p14_p6 = scmp.ge.s32.totalorder %s17_s11, 4   ;;  %s816_s7 = smov %s569_s8 }
  0xc0   : > { %s817_s8 = smov %s658_s20  ;;  %s818_s9 = smov %s577_s10 }
  0xc1   : > { %s819_s10 = smov %s821_s14  ;;  %16 = sbr.rel (!%p14_p6) target bundleno = 6 (0x6), region = 69 }
  0xc8   :  { %311 = vsyncpa [#allocation3], 1 }
  0xc9   :  { %313 = vsyncpa [#allocation3 + $0x1], 1 }
  0xca   :  { %314 = vsyncpa [#allocation4], 1 }
  0xcb   :  { %316 = vsyncpa [#allocation4 + $0x1], 1 }

</bundles_post_ra>
